<compile_context>
chip_gen: v7x
topology: tpu7x:2x2x1
jax: 0.10.0
libtpu: 0.0.40
codegen_flags: <defaults>
</compile_context>

<pallas_src>
import functools

import jax
import jax.numpy as jnp
from jax.experimental import pallas as pl
from jax.experimental.pallas import tpu as pltpu


def _round_up(x: int, m: int) -> int:
    return ((x + m - 1) // m) * m


_SLACK = 2 << 20  # headroom for intermediates / misc inside our own estimate


def _physical_vmem_bytes() -> int:
    """Per-TensorCore physical VMEM (128 MiB on v5e/v6e, 64 MiB on v7x)."""
    try:
        return int(pltpu.get_tpu_info().vmem_capacity_bytes)
    except Exception:
        return 64 << 20  # conservative fallback: assume the smallest (v7x)


def _vmem_cap(phys: int) -> int:
    # Never request the whole chip: leave headroom for Mosaic internal scratch,
    # semaphores and the pipeline's own buffers.
    #   128 MiB (v5e/v6e) -> ~108 MiB usable;  64 MiB (v7x) -> ~52 MiB usable.
    return min(phys - (12 << 20), int(phys * 0.85))


# ---------------------------------------------------------------------------
# Kernels
# ---------------------------------------------------------------------------
def _mlp_resident_kernel(x_ref, w1_ref, b1_ref, w2_ref, b2_ref, o_ref):
    # linear1: (TB, In) @ (In, H) with f32 accumulation on the MXU.
    h = jnp.dot(x_ref[...], w1_ref[...], preferred_element_type=jnp.float32)
    h = jnp.maximum(h + b1_ref[...].astype(jnp.float32), 0.0)   # bias + ReLU in f32
    # linear2: (TB, H) @ (H, Out); h cast to the weight dtype (bf16 MXU path
    # when weights are bf16).
    y = jnp.dot(h.astype(w2_ref.dtype), w2_ref[...],
                preferred_element_type=jnp.float32)
    o_ref[...] = (y + b2_ref[...].astype(jnp.float32)).astype(o_ref.dtype)


def _mlp_ktiled_kernel(x_ref, w1_ref, b1_ref, w2_ref, b2_ref, o_ref, acc_ref):
    # Grid = (batch tiles, hidden tiles); hidden axis is the reduction axis.
    k = pl.program_id(1)

    @pl.when(k == 0)
    def _():
        acc_ref[...] = jnp.zeros_like(acc_ref)

    h = jnp.dot(x_ref[...], w1_ref[...], preferred_element_type=jnp.float32)
    h = jnp.maximum(h + b1_ref[...].astype(jnp.float32), 0.0)
    acc_ref[...] += jnp.dot(h.astype(w2_ref.dtype), w2_ref[...],
                            preferred_element_type=jnp.float32)

    @pl.when(k == pl.num_programs(1) - 1)
    def _():
        o_ref[...] = (acc_ref[...] + b2_ref[...].astype(jnp.float32)
                      ).astype(o_ref.dtype)


# ---------------------------------------------------------------------------
# Tile selection (runs at trace time on static shapes)
# ---------------------------------------------------------------------------
def _tb_candidates(B: int, block_b: int):
    cands = []
    if B <= block_b:
        cands.append(B)                       # one full-extent batch block
    for t in (1024, 512, 256, 128, 64, 32, 16, 8):
        if t <= block_b and t < B:
            cands.append(t)                   # multiple-of-8 tiles, ragged tail
    return cands or [B]


def _resident_bytes(TB, In, H, Out, x_it, w_it):
    wbytes = (In * H + H * Out + H + Out) * w_it      # single-buffered weights
    act = 2 * TB * (In + Out) * x_it                  # double-buffered act tiles
    tmp = TB * (H + Out) * 4                          # f32 intermediates
    return wbytes + act + tmp + _SLACK


def _ktiled_bytes(TB, TH, In, Out, x_it, w_it):
    wtiles = 2 * (In * TH + TH + TH * Out) * w_it + Out * w_it
    act = 2 * TB * (In + Out) * x_it
    tmp = TB * TH * 4 + 2 * TB * Out * 4              # h tile, y tile, acc scratch
    return wtiles + act + tmp + _SLACK


# ---------------------------------------------------------------------------
# Public forward
# ---------------------------------------------------------------------------
@functools.partial(jax.jit, static_argnames=("block_b",))
def base_model_forward(x, w1, b1, w2, b2, block_b=1024):
    """Pallas-fused Linear -> ReLU -> Linear.

    x:  (B, In)
    w1: (In, H)    (transposed from PyTorch's (H, In))
    b1: (1, H)
    w2: (H, Out)   (transposed from PyTorch's (Out, H))
    b2: (1, Out)
    """
    B, In = x.shape
    H = w1.shape[1]
    Out = w2.shape[1]
    x_it = jnp.dtype(x.dtype).itemsize
    w_it = jnp.dtype(w1.dtype).itemsize

    cap = _vmem_cap(_physical_vmem_bytes())

    # Exact (unpadded) work for the scheduler hint.
    flops = 2 * B * (In * H + H * Out)
    bytes_accessed = (B * (In + Out) * x_it
                      + (In * H + H * Out + H + Out) * w_it)
    cost = pl.CostEstimate(flops=flops, transcendentals=0,
                           bytes_accessed=bytes_accessed)

    # Constant-index blocks: fetched once, keep a single VMEM copy.
    const = dict(pipeline_mode=pl.Buffered(1))

    # ---- Path 1: both weight matrices resident in VMEM --------------------
    for TB in _tb_candidates(B, block_b):
        need = _resident_bytes(TB, In, H, Out, x_it, w_it)
        if need <= cap:
            vmem_limit = min(cap, max(32 << 20, _round_up(need, 1 << 20)))
            return pl.pallas_call(
                _mlp_resident_kernel,
                out_shape=jax.ShapeDtypeStruct((B, Out), x.dtype),
                grid=(pl.cdiv(B, TB),),
                in_specs=[
                    pl.BlockSpec((TB, In), lambda i: (i, 0)),        # x: batch-tiled
                    pl.BlockSpec((In, H), lambda i: (0, 0), **const),  # w1 resident
                    pl.BlockSpec((1, H), lambda i: (0, 0), **const),   # b1 resident
                    pl.BlockSpec((H, Out), lambda i: (0, 0), **const),  # w2 resident
                    pl.BlockSpec((1, Out), lambda i: (0, 0), **const),  # b2 resident
                ],
                out_specs=pl.BlockSpec((TB, Out), lambda i: (i, 0)),
                compiler_params=pltpu.CompilerParams(
                    dimension_semantics=("parallel",),   # megacore / v7x 2-TC split
                    vmem_limit_bytes=vmem_limit),
                cost_estimate=cost,
            )(x, w1, b1, w2, b2)

    # ---- Path 2: hidden dim tiled (weights too big to keep resident) ------
    for TB in _tb_candidates(B, block_b):
        for TH in (512, 256, 128):              # 256+ keeps v6e/v7x MXU full-width
            need = _ktiled_bytes(TB, TH, In, Out, x_it, w_it)
            if need > cap:
                continue
            H_pad = _round_up(H, TH)
            if H_pad != H:
                # Weight-only, mathematically exact zero padding (padded w1 cols
                # give ReLU(0)=0, contributing nothing through zero w2 rows).
                # For repeated calls, hoist this to parameter init time.
                w1 = jnp.zeros((In, H_pad), w1.dtype).at[:, :H].set(w1)
                b1 = jnp.zeros((1, H_pad), b1.dtype).at[:, :H].set(b1)
                w2 = jnp.zeros((H_pad, Out), w2.dtype).at[:H, :].set(w2)
            vmem_limit = min(cap, max(32 << 20, _round_up(need, 1 << 20)))
            return pl.pallas_call(
                _mlp_ktiled_kernel,
                out_shape=jax.ShapeDtypeStruct((B, Out), x.dtype),
                grid=(pl.cdiv(B, TB), H_pad // TH),
                in_specs=[
                    pl.BlockSpec((TB, In), lambda i, k: (i, 0)),
                    pl.BlockSpec((In, TH), lambda i, k: (0, k)),
                    pl.BlockSpec((1, TH), lambda i, k: (0, k)),
                    pl.BlockSpec((TH, Out), lambda i, k: (k, 0)),
                    pl.BlockSpec((1, Out), lambda i, k: (0, 0), **const),
                ],
                out_specs=pl.BlockSpec((TB, Out), lambda i, k: (i, 0)),
                scratch_shapes=[pltpu.VMEM((TB, Out), jnp.float32)],
                compiler_params=pltpu.CompilerParams(
                    dimension_semantics=("parallel", "arbitrary"),
                    vmem_limit_bytes=vmem_limit),
                cost_estimate=cost,
            )(x, w1, b1, w2, b2)

    # TODO(synk): add an In-tiled (second reduction axis) fallback for layers
    # whose per-K weight slabs still exceed the per-generation VMEM budget.
    raise ValueError("Layer too large for the implemented tiling strategies.")


def init_linear_params(key, in_features, out_features, dtype=jnp.float32):
    """Deterministic init matching torch.nn.Linear's U(-1/sqrt(in), 1/sqrt(in))."""
    k_w, k_b = jax.random.split(key)
    bound = 1.0 / jnp.sqrt(jnp.float32(in_features))
    # PyTorch weight is (out, in); we keep the transposed (in, out) layout.
    w = jax.random.uniform(k_w, (in_features, out_features), dtype,
                           minval=-bound, maxval=bound)
    b = jax.random.uniform(k_b, (1, out_features), dtype,
                           minval=-bound, maxval=bound)
    return w, b


if __name__ == "__main__":
    # Small shapes implied by the module: x is (batch, input_size).
    batch, input_size, hidden_size, output_size = 8, 32, 64, 16

    root = jax.random.PRNGKey(0)
    kx, k1, k2 = jax.random.split(root, 3)

    x = jax.random.normal(kx, (batch, input_size), jnp.float32)
    w1, b1 = init_linear_params(k1, input_size, hidden_size)
    w2, b2 = init_linear_params(k2, hidden_size, output_size)

    out = base_model_forward(x, w1, b1, w2, b2)
    out = jax.block_until_ready(out)

    # Reference check in plain JAX (same math as PyTorch forward).
    ref = jnp.maximum(x @ w1 + b1, 0.0) @ w2 + b2
    assert out.shape == (batch, output_size)
    assert jnp.allclose(out, ref, atol=1e-5, rtol=1e-5)

    # TODO(synk): calculate_loss is a passthrough to an arbitrary loss_fn and is
    # not part of the forward pass; it is not implemented as a kernel.
    print("KERNEL_OK")
</pallas_src>

<mosaic_0001>
module attributes {stable_mosaic.version = 11 : i64} {
  func.func @_mlp_resident_kernel(%arg0: i32, %arg1: memref<8x32xf32, #tpu.memory_space<vmem>>, %arg2: memref<32x64xf32, #tpu.memory_space<vmem>>, %arg3: memref<1x64xf32, #tpu.memory_space<vmem>>, %arg4: memref<64x16xf32, #tpu.memory_space<vmem>>, %arg5: memref<1x16xf32, #tpu.memory_space<vmem>>, %arg6: memref<8x16xf32, #tpu.memory_space<vmem>>) attributes {dimension_semantics = [#tpu.dimension_semantics<parallel>], iteration_bounds = array<i64: 1>, scalar_prefetch = 0 : i64, scratch_operands = 0 : i64, tpu.core_type = #tpu.core_type<tc>, window_params = [{transform_indices = @transform_0, window_bounds = array<i64: 8, 32>}, {pipeline_mode = #tpu.pipeline_mode<synchronous>, transform_indices = @transform_1, window_bounds = array<i64: 32, 64>}, {pipeline_mode = #tpu.pipeline_mode<synchronous>, transform_indices = @transform_2, window_bounds = array<i64: 1, 64>}, {pipeline_mode = #tpu.pipeline_mode<synchronous>, transform_indices = @transform_3, window_bounds = array<i64: 64, 16>}, {pipeline_mode = #tpu.pipeline_mode<synchronous>, transform_indices = @transform_4, window_bounds = array<i64: 1, 16>}, {transform_indices = @transform_5, window_bounds = array<i64: 8, 16>}]} {
    %c0 = arith.constant 0 : index
    %c0_0 = arith.constant 0 : index
    %0 = vector.load %arg1[%c0, %c0_0] : memref<8x32xf32, #tpu.memory_space<vmem>>, vector<8x32xf32>
    %c0_1 = arith.constant 0 : index
    %c0_2 = arith.constant 0 : index
    %1 = vector.load %arg2[%c0_1, %c0_2] : memref<32x64xf32, #tpu.memory_space<vmem>>, vector<32x64xf32>
    %cst = arith.constant dense<0.000000e+00> : vector<8x64xf32>
    %2 = tpu.matmul %0, %1, %cst {dimension_numbers = #tpu.dot_dimension_numbers<[1], [0], [0], [1], [0, 0, 1, 1], [], []>} : vector<8x32xf32>, vector<32x64xf32>, vector<8x64xf32> -> vector<8x64xf32>
    %c0_3 = arith.constant 0 : index
    %c0_4 = arith.constant 0 : index
    %3 = vector.load %arg3[%c0_3, %c0_4] : memref<1x64xf32, #tpu.memory_space<vmem>>, vector<1x64xf32>
    %4 = vector.broadcast %3 : vector<1x64xf32> to vector<8x64xf32>
    %5 = arith.addf %2, %4 : vector<8x64xf32>
    %cst_5 = arith.constant 0.000000e+00 : f32
    %6 = vector.broadcast %cst_5 : f32 to vector<8x64xf32>
    %7 = arith.maximumf %5, %6 : vector<8x64xf32>
    %c0_6 = arith.constant 0 : index
    %c0_7 = arith.constant 0 : index
    %8 = vector.load %arg4[%c0_6, %c0_7] : memref<64x16xf32, #tpu.memory_space<vmem>>, vector<64x16xf32>
    %cst_8 = arith.constant dense<0.000000e+00> : vector<8x16xf32>
    %9 = tpu.matmul %7, %8, %cst_8 {dimension_numbers = #tpu.dot_dimension_numbers<[1], [0], [0], [1], [0, 0, 1, 1], [], []>} : vector<8x64xf32>, vector<64x16xf32>, vector<8x16xf32> -> vector<8x16xf32>
    %c0_9 = arith.constant 0 : index
    %c0_10 = arith.constant 0 : index
    %10 = vector.load %arg5[%c0_9, %c0_10] : memref<1x16xf32, #tpu.memory_space<vmem>>, vector<1x16xf32>
    %11 = vector.broadcast %10 : vector<1x16xf32> to vector<8x16xf32>
    %12 = arith.addf %9, %11 : vector<8x16xf32>
    %c0_11 = arith.constant 0 : index
    %c0_12 = arith.constant 0 : index
    %13 = vector.load %arg6[%c0_11, %c0_12] : memref<8x16xf32, #tpu.memory_space<vmem>>, vector<8x16xf32>
    tpu.vector_store %arg6[%c0_11, %c0_12], %12 {strides = array<i32>} : memref<8x16xf32, #tpu.memory_space<vmem>>, vector<8x16xf32>,
    return
  }
  func.func @transform_0(%arg0: i32) -> (i32, i32) {
    %c0_i32 = arith.constant 0 : i32
    %c0_i32_0 = arith.constant 0 : i32
    return %arg0, %c0_i32 : i32, i32
  }
  func.func @transform_1(%arg0: i32) -> (i32, i32) {
    %c0_i32 = arith.constant 0 : i32
    %c0_i32_0 = arith.constant 0 : i32
    %c0_i32_1 = arith.constant 0 : i32
    return %c0_i32, %c0_i32_0 : i32, i32
  }
  func.func @transform_2(%arg0: i32) -> (i32, i32) {
    %c0_i32 = arith.constant 0 : i32
    %c0_i32_0 = arith.constant 0 : i32
    %c0_i32_1 = arith.constant 0 : i32
    return %c0_i32, %c0_i32_0 : i32, i32
  }
  func.func @transform_3(%arg0: i32) -> (i32, i32) {
    %c0_i32 = arith.constant 0 : i32
    %c0_i32_0 = arith.constant 0 : i32
    %c0_i32_1 = arith.constant 0 : i32
    return %c0_i32, %c0_i32_0 : i32, i32
  }
  func.func @transform_4(%arg0: i32) -> (i32, i32) {
    %c0_i32 = arith.constant 0 : i32
    %c0_i32_0 = arith.constant 0 : i32
    %c0_i32_1 = arith.constant 0 : i32
    return %c0_i32, %c0_i32_0 : i32, i32
  }
  func.func @transform_5(%arg0: i32) -> (i32, i32) {
    %c0_i32 = arith.constant 0 : i32
    %c0_i32_0 = arith.constant 0 : i32
    return %arg0, %c0_i32 : i32, i32
  }
}

</mosaic_0001>

<bundles_post_ra>
// kernel: base_model_forward.1
= control target key start
LH: loop header
LB: loop body
LE: loop exit
PB: predicated region body
PF: predicated region fallthrough
CT: control target
= control target key end

     0   :  { %v307_v3 = vmov 0.0|0.0   ;;  %vm308_vm0 = vmmov 0   ;;  %v309_v6 = vmov 0.0   ;;  %s398_s0 = inlined_call_operand.vmem [shape: f32[8,32], index: 0, kind: input, shape index: {}]   ;;  %s399_s1 = inlined_call_operand.vmem [shape: f32[32,64], index: 1, kind: input, shape index: {}]   ;;  %s400_s2 = inlined_call_operand.vmem [shape: f32[1,64], index: 2, kind: input, shape index: {}]   ;;  %s401_s3 = inlined_call_operand.vmem [shape: f32[64,16], index: 3, kind: input, shape index: {}]   ;;  %s402_s4 = inlined_call_operand.vmem [shape: f32[1,16], index: 4, kind: input, shape index: {}]   ;;  %s403_s5 = inlined_call_operand.hbm [shape: f32[8,16], index: 5, kind: output, shape index: {}]  }
   0x1   :  { %v22_v0 = vld [vmem:[%s399_s1] sm:$0xff]  ;;  %v23_v1 = vld [vmem:[%s399_s1 + $0x8] sm:$0xff]  ;;  %v24_v2 = vld [vmem:[%s399_s1 + $0x10] sm:$0xff]  ;;  %261 = vmatprep.subr.bf16.mxu0 %v307_v3  ;;  %239 = vmatprep.mubr.msk.f32.mxu0 %vm308_vm0, %v309_v6 }
   0x2   :  { %v262_v4 = vpack.c.bf16 %v23_v1, %v22_v0  ;;  %v25_v5 = vld [vmem:[%s399_s1 + $0x18] sm:$0xff]  ;;  %v108_v7 = vld [vmem:[%s401_s3] sm:$0xff]  ;;  %267 = vmatprep.subr.bf16.mxu1 %v307_v3  ;;  %v109_v8 = vld [vmem:[%s401_s3 + $0x8] sm:$0xff]  ;;  %258 = vmatprep.mubr.msk.f32.mxu1 %vm308_vm0, %v309_v6 }
   0x3   :  { %v110_v9 = vld [vmem:[%s401_s3 + $0x10] sm:$0xff]  ;;  %v111_v10 = vld [vmem:[%s401_s3 + $0x18] sm:$0xff]  ;;  %v265_v11 = vpack.c.bf16 %v25_v5, %v24_v2  ;;  %v268_v12 = vpack.c.bf16 %v109_v8, %v108_v7 }
   0x4   :  { %263 = vmatpush3.bf16.msra.mxu0 %v262_v4 }
   0x5   :  { %264 = vmatprep.subr.bf16.mxu0 %v307_v3 }
   0x6   :  { %10 = vsyncpa [#allocation3], 0  ;;  %269 = vmatpush3.bf16.msra.mxu1 %v268_v12  ;;  %v271_v13 = vpack.c.bf16 %v111_v10, %v110_v9  ;;  %v112_v14 = vld [vmem:[%s401_s3 + $0x20] sm:$0xff]  ;;  %v113_v15 = vld [vmem:[%s401_s3 + $0x28] sm:$0xff]  ;;  %vm33_vm1 = vcmask 261120   ;;  %vm123_vm2 = vcmask 523264  }
   0x7   :  { %270 = vmatprep.subr.bf16.mxu1 %v307_v3  ;;  %v21_v16 = vld [vmem:[%s398_s0] sm:$0xff]  ;;  %v274_v17 = vpack.c.bf16 %v113_v15, %v112_v14  ;;  %v114_v18 = vld [vmem:[%s401_s3 + $0x30] sm:$0xff]  ;;  %v115_v19 = vld [vmem:[%s401_s3 + $0x38] sm:$0xff]  ;;  %s310_s21 = smov [#allocation2]   ;;  %vm197_vm3 = vcmask 130048  }
   0x8   :  { %266 = vmatpush3.bf16.msra.mxu0 %v265_v11  ;;  %v277_v20 = vpack.c.bf16 %v115_v19, %v114_v18  ;;  %v213_v21 = vld [vmem:[%s400_s2] ss:$0 sm:$0xff]  ;;  %s205_s22 = sshll.u32 %s310_s21, 4  ;;  %s206_s22 = int_to_ptr.vmem [resolvable:$true] %s205_s22 }
   0x9   :  { %v215_v26 = vld [vmem:[%s402_s4] ss:$0 sm:$0xff]  ;;  %s283_s3 = scalar_lea.vmem %s206_s22, 128  ;;  %p288_p1 = scmp.lt.s32.totalorder %s206_s22, %s206_s22 }
   0xa   :  { %272 = vmatpush3.bf16.msra.mxu1 %v271_v13  ;;  %p284_p0 = scmp.ne.s32.totalorder %s206_s22, %s283_s3  ;;  %p289_p2 = scmp.lt.s32.totalorder %s283_s3, %s283_s3 }
   0xb   :  { %240 = vmatmul.mubr.msk.f32.vlgmr.msra.gmra.mrb[0].mxu0 %vm33_vm1, %v21_v16  ;;  %273 = vmatprep.subr.bf16.mxu1 %v307_v3 }
   0xc   :  { %p290_p3 = por %p289_p2, %p288_p1 }
   0xe   :  { %275 = vmatpush3.bf16.msra.mxu1 %v274_v17  ;;  %p291_p4 = pnand %p290_p3, %p284_p0 }
   0xf   :  { %276 = vmatprep.subr.bf16.mxu1 %v307_v3 }
  0x12   :  { %278 = vmatpush3.bf16.msra.mxu1 %v277_v20 }
  0xde   :  { %v103_v22 = vpop.f32.mrb[0].mxu0 }
  0xdf   :  { %v104_v23 = vadd.f32 %v213_v21, %v103_v22  ;;  %v241_v24 = vpop.f32.mrb[1].mxu0 }
  0xe1   :  { %v107_v25 = vmax.f32 %v104_v23, 0.0 }
  0xe3   :  { %259 = vmatmul.mubr.msk.f32.vlgmr.msra.gmra.mrb[0].mxu1 %vm123_vm2, %v107_v25 }
 0x1b6   :  { %v193_v27 = vpop.f32.mrb[0].mxu1 }
 0x1b7   :  { %v194_v28 = vadd.f32 %v215_v26, %v193_v27  ;;  %v260_v29 = vpop.f32.mrb[1].mxu1 }
 0x1b9   :  { %198 = vst.msk [vmem:[#allocation2] sm:$0xff] %vm197_vm3, %v194_v28 }
 0x1ba   :  { %294 = shalt.err (!%p291_p4)
}
 0x1bb   :  { %s295_s24 = scalar_lea.hbm %s403_s5, 128 }
 0x1bc   :  { %p296_p5 = scmp.ne.s32.totalorder %s403_s5, %s295_s24  ;;  %p299_p6 = scmp.lt.u32.totalorder %s295_s24, %s403_s5 }
 0x1be   :  { %p301_p7 = pnand %p299_p6, %p296_p5 }
 0x1c0   :  { %304 = shalt.err (!%p301_p7)
}
 0x1c1   :  { %208 = dma.vmem_to_hbm [thread:$0]  %s206_s22, 128, %s403_s5, [#allocation3]  }
 0x1c2   :  { %305 = dma.done.wait [#allocation3], 128  }
 0x1c3   :  { %306 = vsyncadd [#allocation3], 4294967168 }
 0x1c4   :  { %212 = vsyncpa [#allocation3], 1 }

</bundles_post_ra>
